<compile_context>
chip_gen: v6e
topology: v6e:2x2x1
jax: 0.10.0
libtpu: 0.0.40
codegen_flags: <defaults>
</compile_context>

<pallas_src>
import jax
import jax.numpy as jnp
from jax.experimental import pallas as pl
from jax.experimental.pallas import tpu as pltpu

LN_EPS = 1e-6      # norm_layer = partial(nn.LayerNorm, eps=1e-6) in MAE
NEG_INF = -1e9


# ---------------------------------------------------------------- helpers ----
def _layernorm(x, g, b):
    mu = jnp.mean(x, axis=-1, keepdims=True)
    xc = x - mu
    var = jnp.mean(xc * xc, axis=-1, keepdims=True)
    return xc * jax.lax.rsqrt(var + LN_EPS) * g + b


def _row_tile(n, target=512):
    """Largest divisor of n that is <= target and a multiple of 8 (or n itself)."""
    t = min(n, target)
    while t > 1:
        if n % t == 0 and (t % 8 == 0 or t == n):
            return t
        t -= 1
    return n


def _pick_tile_b(batch, s_pad, target_rows=256):
    """Batch tile: stack rows into the GEMM M dim, but keep >=2 parallel grid
    steps when the batch allows it (2 TensorCores on v7x)."""
    tile = max(1, min(batch, target_rows // max(s_pad, 1)))
    while batch % tile:
        tile -= 1
    if batch // tile == 1 and batch > 1:
        tile = max(1, batch // 2)
        while batch % tile:
            tile -= 1
    return tile


# ------------------------------------------------- patch embed (one GEMM) ----
def patch_embed_kernel(p_ref, w_ref, o_ref):
    # (rows, K) @ (K, D), bf16 inputs, f32 accumulate
    o_ref[...] = jnp.dot(p_ref[...], w_ref[...], preferred_element_type=jnp.float32)


def patch_embed_call(patches_bf, w_bf):
    rows, K = patches_bf.shape
    D = w_bf.shape[1]
    rt = _row_tile(rows)
    return pl.pallas_call(
        patch_embed_kernel,
        out_shape=jax.ShapeDtypeStruct((rows, D), jnp.float32),
        grid=(rows // rt,),
        in_specs=[
            pl.BlockSpec((rt, K), lambda i: (i, 0)),
            pl.BlockSpec((K, D), lambda i: (0, 0)),
        ],
        out_specs=pl.BlockSpec((rt, D), lambda i: (i, 0)),
        compiler_params=pltpu.CompilerParams(dimension_semantics=("parallel",)),
    )(patches_bf, w_bf)


# ----------------------------------------- fused transformer stack kernel ----
def make_stack_kernel(tile_b, s_pad, num_heads, head_dim, embed_dim):
    H, hd, D = num_heads, head_dim, embed_dim
    R = tile_b * s_pad
    HB = H * tile_b
    bf16 = jnp.bfloat16

    def kernel(x_ref, kmask_ref,
               wq_ref, wk_ref, wv_ref, bq_ref, bk_ref, bv_ref,
               wproj_ref, bproj_ref,
               g1_ref, b1_ref, g2_ref, b2_ref,
               wfc1_ref, bfc1_ref, wfc2_ref, bfc2_ref,
               gn_ref, bn_ref,
               o_ref, x_sc):
        d = pl.program_id(1)

        @pl.when(d == 0)
        def _():
            x_sc[...] = x_ref[...]

        x = x_sc[...]                                          # (R, D) f32 residual

        # ---- attention: x + proj(MHA(LN1(x))) ----
        h = _layernorm(x, g1_ref[0], b1_ref[0])
        h_rep = jnp.broadcast_to(h.astype(bf16)[None], (H, R, D))
        # per-head projections, heads batched in single einsums
        # (qk scale already folded into wq / bq at parameter-prep time)
        q = jnp.einsum("hnd,hdk->hnk", h_rep, wq_ref[0],
                       preferred_element_type=jnp.float32) + bq_ref[0]
        k = jnp.einsum("hnd,hdk->hnk", h_rep, wk_ref[0],
                       preferred_element_type=jnp.float32) + bk_ref[0]
        v = jnp.einsum("hnd,hdk->hnk", h_rep, wv_ref[0],
                       preferred_element_type=jnp.float32) + bv_ref[0]

        # (H, R, hd) -> (H*tile_b, s_pad, hd): sublane-aligned split (s_pad % 8 == 0),
        # lets scores/context run as ONE batched einsum without mixing samples.
        q3 = q.astype(bf16).reshape(HB, s_pad, hd)
        k3 = k.astype(bf16).reshape(HB, s_pad, hd)
        v3 = v.astype(bf16).reshape(HB, s_pad, hd)

        att = jnp.einsum("bqd,bkd->bqk", q3, k3,
                         preferred_element_type=jnp.float32)   # (HB, s_pad, s_pad)
        att = jax.nn.softmax(att + kmask_ref[...][None, :, :], axis=-1)
        ctx = jnp.einsum("bqk,bkd->bqd", att.astype(bf16), v3,
                         preferred_element_type=jnp.float32)
        ctx = ctx.astype(bf16).reshape(H, R, hd)

        # output projection: accumulate per-head (R, hd) @ (hd, D) into one f32 slab
        attn_out = jnp.dot(ctx[0], wproj_ref[0, 0], preferred_element_type=jnp.float32)
        for hh in range(1, H):
            attn_out = attn_out + jnp.dot(ctx[hh], wproj_ref[0, hh],
                                          preferred_element_type=jnp.float32)
        x = x + attn_out + bproj_ref[0]

        # ---- MLP: x + fc2(GELU(fc1(LN2(x)))) ----
        h2 = _layernorm(x, g2_ref[0], b2_ref[0])
        m = jnp.dot(h2.astype(bf16), wfc1_ref[0],
                    preferred_element_type=jnp.float32) + bfc1_ref[0]
        m = jax.nn.gelu(m, approximate=False)                  # exact GELU (nn.GELU)
        m = jnp.dot(m.astype(bf16), wfc2_ref[0],
                    preferred_element_type=jnp.float32) + bfc2_ref[0]
        x = x + m

        x_sc[...] = x

        @pl.when(d == pl.num_programs(1) - 1)                  # fold final LayerNorm
        def _():
            o_ref[...] = _layernorm(x, gn_ref[...], bn_ref[...])

    return kernel


def stack_call(x2d, kmask, st, gn, bn, *, num_heads, head_dim, tile_b, s_pad):
    rows_all, D = x2d.shape
    depth = st["wq"].shape[0]
    H, hd = num_heads, head_dim
    R = tile_b * s_pad
    num_bt = rows_all // R
    hidden = st["wfc1"].shape[-1]
    kernel = make_stack_kernel(tile_b, s_pad, H, hd, D)

    def dspec(arr):       # per-depth stacked tensor: stream one layer slice per d step
        n = arr.ndim
        return pl.BlockSpec((1,) + tuple(arr.shape[1:]),
                            lambda bt, d, _n=n: (d,) + (0,) * (_n - 1))

    def cspec(arr):       # constant (revisited) tensor
        n = arr.ndim
        return pl.BlockSpec(tuple(arr.shape), lambda bt, d, _n=n: (0,) * _n)

    in_specs = [
        pl.BlockSpec((R, D), lambda bt, d: (bt, 0)),           # x (batch-row tile)
        cspec(kmask),
        dspec(st["wq"]), dspec(st["wk"]), dspec(st["wv"]),
        dspec(st["bq"]), dspec(st["bk"]), dspec(st["bv"]),
        dspec(st["wproj"]), dspec(st["bproj"]),
        dspec(st["g1"]), dspec(st["b1"]), dspec(st["g2"]), dspec(st["b2"]),
        dspec(st["wfc1"]), dspec(st["bfc1"]), dspec(st["wfc2"]), dspec(st["bfc2"]),
        cspec(gn), cspec(bn),
    ]

    # explicit VMEM budget: double-buffered layer slice + x/out blocks + residual
    # scratch + in-kernel intermediates (q/k/v, scores, mlp hidden) + slack
    per_layer = sum(int(st[name].nbytes) // depth for name in st)
    x_blk = R * D * 4
    const = int(kmask.nbytes) + int(gn.nbytes) + int(bn.nbytes)
    scratch = R * D * 4
    work = (H * R * D * 2                       # broadcast lhs (bf16)
            + 3 * H * R * hd * 6                # q, k, v (f32 + bf16)
            + 2 * H * tile_b * s_pad * s_pad * 4  # scores f32 (pre/post softmax)
            + 2 * R * hidden * 4)               # mlp hidden f32
    vmem_limit = int(min(64 << 20,
                         max(32 << 20,
                             2 * (per_layer + 2 * x_blk + const)
                             + scratch + work + (4 << 20))))

    return pl.pallas_call(
        kernel,
        out_shape=jax.ShapeDtypeStruct((rows_all, D), jnp.float32),
        grid=(num_bt, depth),
        in_specs=in_specs,
        out_specs=pl.BlockSpec((R, D), lambda bt, d: (bt, 0)),
        scratch_shapes=[pltpu.VMEM((R, D), jnp.float32)],
        compiler_params=pltpu.CompilerParams(
            dimension_semantics=("parallel", "arbitrary"),
            vmem_limit_bytes=vmem_limit),
    )(x2d, kmask,
      st["wq"], st["wk"], st["wv"], st["bq"], st["bk"], st["bv"],
      st["wproj"], st["bproj"],
      st["g1"], st["b1"], st["g2"], st["b2"],
      st["wfc1"], st["bfc1"], st["wfc2"], st["bfc2"],
      gn, bn)


# ------------------------------------------------------------------- glue ----
def random_masking(x, mask_ratio, key):
    # per-sample shuffle by argsort of uniform noise, exactly like the torch code
    # TODO(synk): data-dependent gather stays in plain JAX (no clean BlockSpec form)
    N, L, D = x.shape
    len_keep = int(L * (1 - mask_ratio))
    noise = jax.random.uniform(key, (N, L))
    ids_shuffle = jnp.argsort(noise, axis=1)
    ids_restore = jnp.argsort(ids_shuffle, axis=1)
    ids_keep = ids_shuffle[:, :len_keep]
    x_masked = jnp.take_along_axis(
        x, jnp.broadcast_to(ids_keep[:, :, None], (N, len_keep, D)), axis=1)
    mask = jnp.ones((N, L), dtype=x.dtype).at[:, :len_keep].set(0.0)
    mask = jnp.take_along_axis(mask, ids_restore, axis=1)
    return x_masked, mask, ids_restore


def encoder_forward(x_img, params, mask_ratio, mask_key, *, patch_size, num_heads):
    B, C, Himg, Wimg = x_img.shape
    p = patch_size
    gh, gw = Himg // p, Wimg // p
    L = gh * gw
    D = params["proj_w"].shape[0]
    head_dim = D // num_heads

    # patch_embed: Conv2d(k=s=patch) == one (B*L, K) @ (K, D) GEMM
    patches = (x_img.reshape(B, C, gh, p, gw, p)
               .transpose(0, 2, 4, 1, 3, 5)
               .reshape(B * L, C * p * p))
    w_t = params["proj_w"].reshape(D, C * p * p).T.astype(jnp.bfloat16)
    x = patch_embed_call(patches.astype(jnp.bfloat16), w_t).reshape(B, L, D)
    # conv bias + pos_embed fused into one (L, D) table, broadcast-added in JAX
    bias_pos = params["proj_b"][None, :] + params["pos_embed"][0, 1:, :]   # (L, D)
    x = x + bias_pos[None]

    x, mask, ids_restore = random_masking(x, mask_ratio, mask_key)

    cls = params["cls_token"] + params["pos_embed"][:, :1, :]              # (1, 1, D)
    cls = jnp.broadcast_to(cls, (B, 1, D))
    x = jnp.concatenate([cls, x], axis=1)                                  # (B, S, D)
    S = x.shape[1]

    # pad seq to a multiple of 8 sublanes; padded keys get an additive -inf mask
    s_pad = -(-S // 8) * 8
    x = jnp.pad(x, ((0, 0), (0, s_pad - S), (0, 0)))
    kmask = jnp.where(jnp.arange(s_pad) < S, 0.0, NEG_INF).astype(jnp.float32)[None, :]

    tile_b = _pick_tile_b(B, s_pad)
    x2d = x.reshape(B * s_pad, D)

    out2d = stack_call(x2d, kmask, params["stacked"],
                       params["norm_g"].reshape(1, D),
                       params["norm_b"].reshape(1, D),
                       num_heads=num_heads, head_dim=head_dim,
                       tile_b=tile_b, s_pad=s_pad)
    out = out2d.reshape(B, s_pad, D)[:, :S, :]
    return out, mask, ids_restore


# --------------------------------------------------------------- params ------
def _stack_blocks(blocks, num_heads):
    """Stack per-block torch-layout weights along a leading depth axis, split the
    fused qkv weight per head, fold the qk scale into wq/bq, cast matmul weights
    to bf16 (f32 accumulation)."""
    D = blocks[0]["wqkv_t"].shape[0]
    H = num_heads
    hd = D // H
    scale = hd ** -0.5
    bf16 = jnp.bfloat16

    def qkv_w(w, which):                         # (D, 3D) -> (H, D, hd)
        return w[:, which * D:(which + 1) * D].reshape(D, H, hd).transpose(1, 0, 2)

    def qkv_b(b, which):                         # (1, 3D) -> (H, 1, hd)
        return b[0, which * D:(which + 1) * D].reshape(H, 1, hd)

    def stack(fn, dtype=jnp.float32):
        return jnp.stack([fn(blk) for blk in blocks]).astype(dtype)

    return {
        "wq": stack(lambda blk: qkv_w(blk["wqkv_t"], 0) * scale, bf16),
        "wk": stack(lambda blk: qkv_w(blk["wqkv_t"], 1), bf16),
        "wv": stack(lambda blk: qkv_w(blk["wqkv_t"], 2), bf16),
        "bq": stack(lambda blk: qkv_b(blk["bqkv"], 0) * scale),
        "bk": stack(lambda blk: qkv_b(blk["bqkv"], 1)),
        "bv": stack(lambda blk: qkv_b(blk["bqkv"], 2)),
        "wproj": stack(lambda blk: blk["wproj_t"].reshape(H, hd, D), bf16),
        "bproj": stack(lambda blk: blk["bproj"]),
        "g1": stack(lambda blk: blk["g1"]), "b1": stack(lambda blk: blk["b1"]),
        "g2": stack(lambda blk: blk["g2"]), "b2": stack(lambda blk: blk["b2"]),
        "wfc1": stack(lambda blk: blk["wfc1_t"], bf16),
        "bfc1": stack(lambda blk: blk["bfc1"]),
        "wfc2": stack(lambda blk: blk["wfc2_t"], bf16),
        "bfc2": stack(lambda blk: blk["bfc2"]),
    }


def init_params(key, *, in_chans, patch_size, num_patches, embed_dim,
                num_heads, mlp_ratio, depth):
    D = embed_dim
    Hmlp = int(D * mlp_ratio)
    keys = jax.random.split(key, 8 + depth)

    def nrm(k, shape, s=0.02):
        return (s * jax.random.normal(k, shape)).astype(jnp.float32)

    blocks = []
    for d in range(depth):
        bkk = jax.random.split(keys[8 + d], 6)
        blocks.append({
            "wqkv_t": nrm(bkk[0], (D, 3 * D)),
            "bqkv": jnp.zeros((1, 3 * D), jnp.float32),   # qkv_bias=True
            "wproj_t": nrm(bkk[1], (D, D)),
            "bproj": jnp.zeros((1, D), jnp.float32),
            "g1": jnp.ones((1, D), jnp.float32), "b1": jnp.zeros((1, D), jnp.float32),
            "g2": jnp.ones((1, D), jnp.float32), "b2": jnp.zeros((1, D), jnp.float32),
            "wfc1_t": nrm(bkk[2], (D, Hmlp)),
            "bfc1": nrm(bkk[3], (1, Hmlp)),
            "wfc2_t": nrm(bkk[4], (Hmlp, D)),
            "bfc2": nrm(bkk[5], (1, D)),
        })

    return {
        "proj_w": nrm(keys[0], (D, in_chans, patch_size, patch_size)),
        "proj_b": nrm(keys[1], (D,)),
        # pos_embed / cls_token are zeros in __init__; random here so the adds matter
        "pos_embed": nrm(keys[2], (1, num_patches + 1, D)),
        "cls_token": nrm(keys[3], (1, 1, D)),
        "norm_g": jnp.ones((D,), jnp.float32),
        "norm_b": jnp.zeros((D,), jnp.float32),
        "stacked": _stack_blocks(blocks, num_heads),
    }


if __name__ == "__main__":
    B, C, HW, PATCH = 2, 4, 16, 8
    EMBED_DIM, HEADS, MLP_RATIO, DEPTH = 32, 4, 4.0, 2
    L = (HW // PATCH) ** 2                     # num_patches = 4
    MASK_RATIO = 0.5                           # len_keep = 2 -> seq = 1 + 2

    key = jax.random.PRNGKey(0)
    k_img, k_par, k_mask = jax.random.split(key, 3)
    x_img = jax.random.normal(k_img, (B, C, HW, HW), dtype=jnp.float32)

    params = init_params(k_par, in_chans=C, patch_size=PATCH, num_patches=L,
                         embed_dim=EMBED_DIM, num_heads=HEADS,
                         mlp_ratio=MLP_RATIO, depth=DEPTH)

    out, mask, ids_restore = encoder_forward(
        x_img, params, MASK_RATIO, k_mask, patch_size=PATCH, num_heads=HEADS)

    jax.block_until_ready(out)
    jax.block_until_ready(mask)
    jax.block_until_ready(ids_restore)

    len_keep = int(L * (1 - MASK_RATIO))
    assert out.shape == (B, 1 + len_keep, EMBED_DIM)
    assert mask.shape == (B, L) and ids_restore.shape == (B, L)
    assert bool(jnp.all(jnp.isfinite(out)))
    print("KERNEL_OK")
</pallas_src>

<mosaic_0001>
module attributes {stable_mosaic.version = 11 : i64} {
  func.func @patch_embed_kernel(%arg0: i32, %arg1: memref<8x256xbf16, #tpu.memory_space<vmem>>, %arg2: memref<256x32xbf16, #tpu.memory_space<vmem>>, %arg3: memref<8x32xf32, #tpu.memory_space<vmem>>) attributes {dimension_semantics = [#tpu.dimension_semantics<parallel>], iteration_bounds = array<i64: 1>, scalar_prefetch = 0 : i64, scratch_operands = 0 : i64, tpu.core_type = #tpu.core_type<tc>, window_params = [{transform_indices = @transform_0, window_bounds = array<i64: 8, 256>}, {pipeline_mode = #tpu.pipeline_mode<synchronous>, transform_indices = @transform_1, window_bounds = array<i64: 256, 32>}, {transform_indices = @transform_2, window_bounds = array<i64: 8, 32>}]} {
    %c0 = arith.constant 0 : index
    %c0_0 = arith.constant 0 : index
    %0 = vector.load %arg1[%c0, %c0_0] : memref<8x256xbf16, #tpu.memory_space<vmem>>, vector<8x256xbf16>
    %c0_1 = arith.constant 0 : index
    %c0_2 = arith.constant 0 : index
    %1 = vector.load %arg2[%c0_1, %c0_2] : memref<256x32xbf16, #tpu.memory_space<vmem>>, vector<256x32xbf16>
    %cst = arith.constant dense<0.000000e+00> : vector<8x32xf32>
    %2 = tpu.matmul %0, %1, %cst {dimension_numbers = #tpu.dot_dimension_numbers<[1], [0], [0], [1], [0, 0, 1, 1], [], []>} : vector<8x256xbf16>, vector<256x32xbf16>, vector<8x32xf32> -> vector<8x32xf32>
    %c0_3 = arith.constant 0 : index
    %c0_4 = arith.constant 0 : index
    %3 = vector.load %arg3[%c0_3, %c0_4] : memref<8x32xf32, #tpu.memory_space<vmem>>, vector<8x32xf32>
    tpu.vector_store %arg3[%c0_3, %c0_4], %2 {strides = array<i32>} : memref<8x32xf32, #tpu.memory_space<vmem>>, vector<8x32xf32>,
    return
  }
  func.func @transform_0(%arg0: i32) -> (i32, i32) {
    %c0_i32 = arith.constant 0 : i32
    %c0_i32_0 = arith.constant 0 : i32
    return %arg0, %c0_i32 : i32, i32
  }
  func.func @transform_1(%arg0: i32) -> (i32, i32) {
    %c0_i32 = arith.constant 0 : i32
    %c0_i32_0 = arith.constant 0 : i32
    %c0_i32_1 = arith.constant 0 : i32
    return %c0_i32, %c0_i32_0 : i32, i32
  }
  func.func @transform_2(%arg0: i32) -> (i32, i32) {
    %c0_i32 = arith.constant 0 : i32
    %c0_i32_0 = arith.constant 0 : i32
    return %arg0, %c0_i32 : i32, i32
  }
}

</mosaic_0001>

<bundles_post_ra>
// kernel: tpu_custom_call.1
= control target key start
LH: loop header
LB: loop body
LE: loop exit
PB: predicated region body
PF: predicated region fallthrough
CT: control target
= control target key end

     0   :  { %s356_s0 = inlined_call_operand.vmem [shape: bf16[8,256], index: 0, kind: input, shape index: {}]   ;;  %s357_s1 = inlined_call_operand.vmem [shape: bf16[256,32], index: 1, kind: input, shape index: {}]   ;;  %s358_s2 = inlined_call_operand.hbm [shape: f32[8,32], index: 2, kind: output, shape index: {}]  }
   0x1   :  { %v246_v0 = vld [vmem:[%s357_s1 + $0x78] sm:$0xff]   ;;  %v248_v2 = vld [vmem:[%s357_s1 + $0x70] sm:$0xff]   ;;  %v250_v4 = vld [vmem:[%s357_s1 + $0x68] sm:$0xff]  }
   0x2   :  { %v247_v1 = vld [vmem:[%s357_s1 + $0x38] sm:$0xff]   ;;  %223 = vmatprep.subr.bf16.mxu0 %v246_v0  ;;  %v249_v3 = vld [vmem:[%s357_s1 + $0x30] sm:$0xff]   ;;  %v251_v5 = vld [vmem:[%s357_s1 + $0x28] sm:$0xff]  }
   0x3   :  { %224 = vmatpush3.bf16.msra.mxu0 %v247_v1  ;;  %v252_v6 = vld [vmem:[%s357_s1 + $0x60] sm:$0xff]   ;;  %v254_v8 = vld [vmem:[%s357_s1 + $0x58] sm:$0xff]   ;;  %v256_v10 = vld [vmem:[%s357_s1 + $0x50] sm:$0xff]  }
   0x4   :  { %225 = vmatprep.subr.bf16.mxu0 %v248_v2  ;;  %v253_v7 = vld [vmem:[%s357_s1 + $0x20] sm:$0xff]   ;;  %v255_v9 = vld [vmem:[%s357_s1 + $0x18] sm:$0xff]  }
   0x5   :  { %v13_v11 = vld [vmem:[%s356_s0] sm:$0xff] }
   0x7   :  { %226 = vmatpush3.bf16.msra.mxu0 %v249_v3 }
   0x8   :  { %227 = vmatprep.subr.bf16.mxu0 %v250_v4 }
   0xb   :  { %228 = vmatpush3.bf16.msra.mxu0 %v251_v5 }
   0xc   :  { %229 = vmatprep.subr.bf16.mxu0 %v252_v6 }
   0xf   :  { %230 = vmatpush3.bf16.msra.mxu0 %v253_v7 }
  0x10   :  { %231 = vmatprep.subr.bf16.mxu0 %v254_v8 }
  0x11   :  { %7 = vsyncpa [#allocation3], 0  ;;  %v206_v12 = vcombine.high %v13_v11, %v13_v11  ;;  %v257_v13 = vld [vmem:[%s357_s1 + $0x10] sm:$0xff]   ;;  %v258_v14 = vld [vmem:[%s357_s1 + $0x48] sm:$0xff]   ;;  %v205_v18 = vcombine.low %v13_v11, %v13_v11  ;;  %s286_s14 = smov [#allocation2]   ;;  %vm189_vm0 = vcmask 261120  }
  0x12   :  { %v259_v15 = vld [vmem:[%s357_s1 + $0x8] sm:$0xff]   ;;  %v260_v16 = vld [vmem:[%s357_s1 + $0x40] sm:$0xff]   ;;  %s197_s15 = sshll.u32 %s286_s14, 4  ;;  %s198_s15 = int_to_ptr.vmem [resolvable:$true] %s197_s15 }
  0x13   :  { %232 = vmatpush3.bf16.msra.mxu0 %v255_v9  ;;  %181 = vmatprep.mubr.bf16.mxu0 %v206_v12  ;;  %v261_v17 = vld [vmem:[%s357_s1] sm:$0xff]   ;;  %s264_s16 = scalar_lea.vmem %s198_s15, 128  ;;  %p269_p1 = scmp.lt.s32.totalorder %s198_s15, %s198_s15 }
  0x14   :  { %233 = vmatprep.subr.bf16.mxu0 %v256_v10  ;;  %p265_p0 = scmp.ne.s32.totalorder %s198_s15, %s264_s16  ;;  %p270_p2 = scmp.lt.s32.totalorder %s264_s16, %s264_s16 }
  0x16   :  { %p271_p3 = por %p270_p2, %p269_p1 }
  0x17   :  { %234 = vmatpush3.bf16.msra.mxu0 %v257_v13 }
  0x18   :  { %235 = vmatprep.subr.bf16.mxu0 %v258_v14  ;;  %p272_p4 = pnand %p271_p3, %p265_p0 }
  0x1b   :  { %236 = vmatpush3.bf16.msra.mxu0 %v259_v15 }
  0x1c   :  { %237 = vmatprep.subr.bf16.mxu0 %v260_v16 }
  0x1f   :  { %238 = vmatpush3.bf16.msra.mxu0 %v261_v17 }
  0x22   :  { %182 = vmatmul.mubr.bf16.vlgmr.msra.gmra.mxu0 %v205_v18 }
  0xe2   :  { %v239_v19 = vpop.f32.mrf.mxu0 }
  0xe4   :  { %v240_v20 = vpop.f32.mrf.mxu0 }
  0xe5   :  { %v241_v21 = vadd.f32 %v240_v20, %v239_v19 }
  0xe6   :  { %v242_v22 = vpop.f32.mrf.mxu0 }
  0xe7   :  { %190 = vst.msk [vmem:[#allocation2] sm:$0xff] %vm189_vm0, %v241_v21 }
  0xe8   :  { %v243_v23 = vpop.f32.mrf.mxu0 }
  0xe9   :  { %275 = shalt.err (!%p272_p4)
}
  0xea   :  { %200 = dma.vmem_to_hbm [thread:$0]  %s198_s15, 128, %s358_s2, [#allocation3]  }
  0xeb   :  { %284 = dma.done.wait [#allocation3], 128  }
  0xec   :  { %285 = vsyncadd [#allocation3], 4294967168 }
  0xed   :  { %204 = vsyncpa [#allocation3], 1 }

</bundles_post_ra>
